<compile_context>
chip_gen: v7x
topology: tpu7x:2x2x1
jax: 0.10.0
libtpu: 0.0.40
codegen_flags: <defaults>
</compile_context>

<pallas_src>
import functools

import jax
import jax.numpy as jnp
from jax.experimental import pallas as pl
from jax.experimental.pallas import tpu as pltpu


def gce_kernel(logits_ref, targets_ref, loss_ref, *, q):
    # (TILE_N, C) logits tile; numerically stable log-softmax along the lane
    # (class) axis.
    x = logits_ref[...]                                       # (T, C) native dtype
    n_rows, c = x.shape

    # Row max on the native dtype (exact for max); the f32 upcast is fused
    # into the subtraction instead of materializing a full f32 copy of x.
    m = jnp.max(x, axis=-1, keepdims=True)                    # (T, 1)
    z = x.astype(jnp.float32) - m.astype(jnp.float32)         # (T, C) f32
    e = jnp.exp(z)                                            # EUP, dominant cost
    log_denom = jnp.log(jnp.sum(e, axis=-1, keepdims=True))   # (T, 1)

    # One-hot gather of the target class using a lane iota.
    lane = jax.lax.broadcasted_iota(jnp.int32, (n_rows, c), 1)
    tgt = targets_ref[...]                                    # (T, 1) int32
    onehot = lane == tgt                                      # (T, C) bool

    z_y = jnp.sum(jnp.where(onehot, z, 0.0), axis=-1, keepdims=True)  # (T, 1)
    log_p_y = z_y - log_denom                                 # log softmax @ target

    # loss_weight = Yg**q * q = exp(q * log_p_y) * q
    weight = jnp.exp(q * log_p_y) * q
    # cross_entropy(reduction='none') = -log_p_y
    loss_ref[...] = (-log_p_y) * weight
    # TODO(synk): lane-dense (1, T) output would need an in-kernel (T,1)->(1,T)
    # relayout; with byte-sized tiles the per-step store overhead is negligible
    # vs. the (T, C) logits read, so the known-good (T, 1) store is kept.
    # TODO(synk): the PyTorch host-side NaN checks (raise NameError) have no
    # in-kernel equivalent; omitted.


def _round_up(x, m):
    return ((x + m - 1) // m) * m


def _choose_tile_n(n, c, itemsize, sublane):
    """Rows per block, sized by a per-row VMEM byte model (no fixed row cap)."""
    n_rows = _round_up(n, sublane)
    # Per-row VMEM cost of one grid step:
    #   * logits block, double-buffered:              2 * C * itemsize
    #   * f32 (T, C) intermediates (z, e, slack):     4 * C * 4
    #   * skinny (T, 1) columns (targets/output blocks double-buffered plus
    #     in-kernel row scalars), each padded to a 128-lane vreg row: ~8 * 512
    per_row = 2 * c * itemsize + 4 * c * 4 + 8 * 512
    budget = 20 * 1024 * 1024          # estimated footprint; hard limit is 48 MiB
    tile = max(sublane, (budget // per_row) // sublane * sublane)
    tile = min(tile, n_rows)
    # v7x megacore: if one tile swallows the whole batch but the batch can be
    # split while keeping >= 512 KiB of logits per block, split so the
    # "parallel" grid axis gives both TensorCores work.
    if tile >= n_rows:
        min_block_bytes = 512 * 1024
        for parts in (8, 4, 2):
            cand = _round_up(pl.cdiv(n_rows, parts), sublane)
            if cand < n_rows and cand * c * itemsize >= min_block_bytes:
                tile = cand
                break
    return tile
    # TODO(synk): for vocab-sized C where even a (sublane, C) block plus its
    # f32 intermediates exceeds VMEM, a second "arbitrary" grid axis over C
    # with an online-softmax accumulation is required (hard failure today).


def generalized_ce_loss(logits, targets, q=0.7, tile_n=None):
    """logits: (N, C) float; targets: (N,) int. Returns per-sample loss (N,) f32."""
    n, c = logits.shape
    itemsize = jnp.dtype(logits.dtype).itemsize
    sublane = 16 if itemsize < 4 else 8

    if tile_n is None:
        tile_n = _choose_tile_n(n, c, itemsize, sublane)
    else:
        tile_n = max(sublane, _round_up(tile_n, sublane))
    num_tiles = pl.cdiv(n, tile_n)

    # Only the tiny targets column is reshaped host-side; the (N, C) logits are
    # streamed as-is (ragged tail block handled in-kernel / sliced off below).
    tgt = targets.astype(jnp.int32).reshape(n, 1)

    # TODO(synk): for very narrow C (< 128) every vreg lane beyond C is wasted;
    # repacking 128//C samples per lane row would be needed to recover it.
    out = pl.pallas_call(
        functools.partial(gce_kernel, q=q),
        out_shape=jax.ShapeDtypeStruct((num_tiles * tile_n, 1), jnp.float32),
        grid=(num_tiles,),
        in_specs=[
            pl.BlockSpec((tile_n, c), lambda i: (i, 0)),
            pl.BlockSpec((tile_n, 1), lambda i: (i, 0)),
            # TODO(synk): pipeline_mode=pl.Buffered(3) on the logits spec once
            # profiling shows exposed DMA and VMEM headroom allows it.
        ],
        out_specs=pl.BlockSpec((tile_n, 1), lambda i: (i, 0)),
        compiler_params=pltpu.CompilerParams(
            dimension_semantics=("parallel",),
            vmem_limit_bytes=48 * 1024 * 1024,
        ),
        cost_estimate=pl.CostEstimate(
            flops=6 * n * c,
            transcendentals=n * c + 2 * n,
            bytes_accessed=n * c * itemsize + 2 * n * 4,
        ),
    )(logits, tgt)
    return out[:n, 0]


def _reference(logits, targets, q=0.7):
    logp = jax.nn.log_softmax(logits.astype(jnp.float32), axis=1)
    p = jnp.exp(logp)
    yg = jnp.take_along_axis(p, targets[:, None], axis=1)[:, 0]
    ce = -jnp.take_along_axis(logp, targets[:, None], axis=1)[:, 0]
    return ce * (yg ** q) * q


if __name__ == "__main__":
    key = jax.random.PRNGKey(0)
    k1, k2, k3, k4, k5, k6 = jax.random.split(key, 6)

    # Case 1: small, exact-tile shapes (batch=8, classes=32).
    N1, C1 = 8, 32
    logits1 = jax.random.normal(k1, (N1, C1), dtype=jnp.float32)
    targets1 = jax.random.randint(k2, (N1,), 0, C1, dtype=jnp.int32)
    loss1 = jax.block_until_ready(generalized_ce_loss(logits1, targets1, q=0.7))
    ref1 = _reference(logits1, targets1, q=0.7)
    assert loss1.shape == (N1,)
    assert jnp.allclose(loss1, ref1, atol=1e-5, rtol=1e-5), (loss1, ref1)

    # Case 2: batch not a multiple of the sublane tile -> single ragged block
    # (exercises the no-pad / out-of-bounds-tail-read path).
    N2, C2 = 13, 40
    logits2 = jax.random.normal(k3, (N2, C2), dtype=jnp.float32)
    targets2 = jax.random.randint(k4, (N2,), 0, C2, dtype=jnp.int32)
    loss2 = jax.block_until_ready(generalized_ce_loss(logits2, targets2, q=0.7))
    ref2 = _reference(logits2, targets2, q=0.7)
    assert loss2.shape == (N2,)
    assert jnp.allclose(loss2, ref2, atol=1e-5, rtol=1e-5), (loss2, ref2)

    # Case 3: multi-tile grid with a ragged tail block (tile override keeps the
    # shapes small while exercising grid > 1 without any host-side padding).
    N3, C3 = 50, 128
    logits3 = jax.random.normal(k5, (N3, C3), dtype=jnp.float32)
    targets3 = jax.random.randint(k6, (N3,), 0, C3, dtype=jnp.int32)
    loss3 = jax.block_until_ready(
        generalized_ce_loss(logits3, targets3, q=0.7, tile_n=16))
    ref3 = _reference(logits3, targets3, q=0.7)
    assert loss3.shape == (N3,)
    assert jnp.allclose(loss3, ref3, atol=1e-5, rtol=1e-5), (loss3, ref3)

    print("KERNEL_OK")
</pallas_src>

<mosaic_0001>
module attributes {stable_mosaic.version = 11 : i64} {
  func.func @gce_kernel(%arg0: i32, %arg1: memref<8x32xf32, #tpu.memory_space<vmem>>, %arg2: memref<8x1xi32, #tpu.memory_space<vmem>>, %arg3: memref<8x1xf32, #tpu.memory_space<vmem>>) attributes {dimension_semantics = [#tpu.dimension_semantics<parallel>], iteration_bounds = array<i64: 1>, scalar_prefetch = 0 : i64, scratch_operands = 0 : i64, tpu.core_type = #tpu.core_type<tc>, window_params = [{transform_indices = @transform_0, window_bounds = array<i64: 8, 32>}, {transform_indices = @transform_1, window_bounds = array<i64: 8, 1>}, {transform_indices = @transform_2, window_bounds = array<i64: 8, 1>}]} {
    %c0 = arith.constant 0 : index
    %c0_0 = arith.constant 0 : index
    %0 = vector.load %arg1[%c0, %c0_0] : memref<8x32xf32, #tpu.memory_space<vmem>>, vector<8x32xf32>
    %cst = arith.constant dense<0xFF800000> : vector<8xf32>
    %1 = vector.multi_reduction <maximumf>, %0, %cst [1] : vector<8x32xf32> to vector<8xf32>
    %2 = vector.shape_cast %1 : vector<8xf32> to vector<8x1xf32>
    %3 = vector.broadcast %2 : vector<8x1xf32> to vector<8x32xf32>
    %4 = arith.subf %0, %3 : vector<8x32xf32>
    %5 = math.exp %4 : vector<8x32xf32>
    %cst_1 = arith.constant dense<0.000000e+00> : vector<8xf32>
    %6 = vector.multi_reduction <add>, %5, %cst_1 [1] : vector<8x32xf32> to vector<8xf32>
    %7 = vector.shape_cast %6 : vector<8xf32> to vector<8x1xf32>
    %8 = math.log %7 : vector<8x1xf32>
    %9 = tpu.iota {dimensions = array<i32: 1>} : vector<8x32xi32>
    %c0_2 = arith.constant 0 : index
    %c0_3 = arith.constant 0 : index
    %10 = vector.load %arg2[%c0_2, %c0_3] : memref<8x1xi32, #tpu.memory_space<vmem>>, vector<8x1xi32>
    %11 = vector.broadcast %10 : vector<8x1xi32> to vector<8x32xi32>
    %12 = arith.cmpi eq, %9, %11 : vector<8x32xi32>
    %cst_4 = arith.constant 0.000000e+00 : f32
    %13 = vector.broadcast %cst_4 : f32 to vector<8x32xf32>
    %14 = arith.select %12, %4, %13 : vector<8x32xi1>, vector<8x32xf32>
    %cst_5 = arith.constant dense<0.000000e+00> : vector<8xf32>
    %15 = vector.multi_reduction <add>, %14, %cst_5 [1] : vector<8x32xf32> to vector<8xf32>
    %16 = vector.shape_cast %15 : vector<8xf32> to vector<8x1xf32>
    %17 = arith.subf %16, %8 : vector<8x1xf32>
    %cst_6 = arith.constant 0.699999988 : f32
    %18 = vector.broadcast %cst_6 : f32 to vector<8x1xf32>
    %19 = arith.mulf %18, %17 : vector<8x1xf32>
    %20 = math.exp %19 : vector<8x1xf32>
    %cst_7 = arith.constant 0.699999988 : f32
    %21 = vector.broadcast %cst_7 : f32 to vector<8x1xf32>
    %22 = arith.mulf %20, %21 : vector<8x1xf32>
    %cst_8 = arith.constant 0.000000e+00 : f32
    %23 = vector.broadcast %cst_8 : f32 to vector<8x1xf32>
    %24 = arith.subf %23, %17 : vector<8x1xf32>
    %25 = arith.mulf %24, %22 : vector<8x1xf32>
    %c0_9 = arith.constant 0 : index
    %c0_10 = arith.constant 0 : index
    %26 = vector.load %arg3[%c0_9, %c0_10] : memref<8x1xf32, #tpu.memory_space<vmem>>, vector<8x1xf32>
    tpu.vector_store %arg3[%c0_9, %c0_10], %25 {strides = array<i32>} : memref<8x1xf32, #tpu.memory_space<vmem>>, vector<8x1xf32>,
    return
  }
  func.func @transform_0(%arg0: i32) -> (i32, i32) {
    %c0_i32 = arith.constant 0 : i32
    %c0_i32_0 = arith.constant 0 : i32
    return %arg0, %c0_i32 : i32, i32
  }
  func.func @transform_1(%arg0: i32) -> (i32, i32) {
    %c0_i32 = arith.constant 0 : i32
    %c0_i32_0 = arith.constant 0 : i32
    return %arg0, %c0_i32 : i32, i32
  }
  func.func @transform_2(%arg0: i32) -> (i32, i32) {
    %c0_i32 = arith.constant 0 : i32
    %c0_i32_0 = arith.constant 0 : i32
    return %arg0, %c0_i32 : i32, i32
  }
}

</mosaic_0001>

<bundles_post_ra>
// kernel: tpu_custom_call.1
= control target key start
LH: loop header
LB: loop body
LE: loop exit
PB: predicated region body
PF: predicated region fallthrough
CT: control target
= control target key end

     0   :  { %vm12_vm0 = vcmask 261120   ;;  %v56_v1 = vmov 0   ;;  %v24_v7 = vlaneseq  ;;  %vm42_vm2 = vcmask 7168   ;;  %s84_s0 = inlined_call_operand.vmem [shape: f32[8,32], index: 0, kind: input, shape index: {}]   ;;  %s85_s1 = inlined_call_operand.vmem [shape: s32[8,1], index: 1, kind: input, shape index: {}]   ;;  %s86_s2 = inlined_call_operand.vmem [shape: f32[8,1], index: 2, kind: output, shape index: {}]  }
   0x1   :  { %v11_v0 = vld [vmem:[%s84_s0] sm:$0xff]  ;;  %49 = vset.pattern.permute.xlu0 %v56_v1 }
   0x2   :  { %v13_v2 = vsel %vm12_vm0, %v11_v0, -inf  ;;  %v26_v3 = vld [vmem:[%s85_s1] sm:$0xff]  ;;  %v25_v8 = vand.u32 127, %v24_v7 }
   0x3   :  { %14 = vmax.xlane.f32.xlu0 %v13_v2 }
  0x19   :  { %28 = vperm.xlu0 %49, %v26_v3  }
  0x90   :  { %v15_v4 = vpop.xlane.xlu0 %14 }
  0x91   :  { %v16_v5 = vsub.f32 %v11_v0, %v15_v4 }
  0x93   :  { %v17_v6 = vmul.f32 1.442695, %v16_v5 }
  0x95   :  { %50 = vpow2.f32 %v17_v6 }
  0x98   :  { %v29_v9 = vpop.permute.xlu0 %28 }
  0x99   :  { %vm30_vm1 = vcmp.eq.s32.totalorder %v25_v8, %v29_v9 }
  0x9a   :  { %v31_v12 = vsel %vm30_vm1, %v16_v5, 0.0 }
  0x9b   :  { %v32_v13 = vsel %vm12_vm0, %v31_v12, 0.0 }
  0x9f   :  { %v51_v10 = vpop.eup %50 }
  0xa0   :  { %v19_v11 = vsel %vm12_vm0, %v51_v10, 0.0 }
  0xa1   :  { %20 = vadd.xlane.f32.xlu1 %v19_v11 }
  0xa5   :  { %33 = vadd.xlane.f32.xlu1 %v32_v13 }
 0x12e   :  { %v21_v14 = vpop.xlane.xlu1 %20 }
 0x12f   :  { %52 = vlog2.f32 %v21_v14 }
 0x132   :  { %v34_v17 = vpop.xlane.xlu1 %33 }
 0x139   :  { %v53_v15 = vpop.eup %52 }
 0x13a   :  { %v23_v16 = vmul.f32 0.6931472, %v53_v15 }
 0x13c   :  { %v35_v18 = vsub.f32 %v34_v17, %v23_v16 }
 0x13e   :  { %v36_v19 = vmul.f32 0.7, %v35_v18  ;;  %v40_v23 = vsub.f32 0.0, %v35_v18 }
 0x140   :  { %v37_v20 = vmul.f32 1.442695, %v36_v19 }
 0x142   :  { %54 = vpow2.f32 %v37_v20 }
 0x14c   :  { %v55_v21 = vpop.eup %54 }
 0x14d   :  { %v39_v22 = vmul.f32 0.7, %v55_v21 }
 0x14f   :  { %v41_v24 = vmul.f32 %v40_v23, %v39_v22 }
 0x151   :  { %43 = vst.msk [vmem:[%s86_s2] sm:$0xff] %vm42_vm2, %v41_v24 }

</bundles_post_ra>
